<compile_context>
chip_gen: v7x
topology: tpu7x:2x2x1
jax: 0.10.0
libtpu: 0.0.40
codegen_flags: <defaults>
</compile_context>

<pallas_src>
import functools

import jax
import jax.numpy as jnp
from jax.experimental import pallas as pl
from jax.experimental.pallas import tpu as pltpu


def _round_up(x, m):
    return ((x + m - 1) // m) * m


def _linear_kernel(state_ref, w_ref, b_ref, out_ref):
    # state_ref: (TB, D), w_ref: (D, C), b_ref: (1, C), out_ref: (TB, C)
    acc = jnp.dot(
        state_ref[...],
        w_ref[...],
        preferred_element_type=jnp.float32,
    )
    out_ref[...] = (acc + b_ref[...]).astype(out_ref.dtype)


def prepare_params(weight, bias):
    """One-time parameter prep (hoist off the per-call critical path).

    weight: [C, D] (nn.Linear layout)  -> w_t:  [D, C] (MXU-ready RHS)
    bias:   [C]                        -> b_row:[1, C]
    """
    w_t = jnp.asarray(weight).T
    b_row = jnp.asarray(bias).reshape(1, -1)
    return w_t, b_row


@functools.partial(jax.jit, static_argnames=("block_b", "core_parallel"))
def inform_slot_tracker_forward(state, w_t, b_row, *, block_b=1024, core_parallel=False):
    """Forward of InformSlotTracker.

    state: [B, D], w_t: [D, C] (pre-transposed via prepare_params), b_row: [1, C]
    Returns logits [B, C] == state @ W.T + b.
    """
    B, D = state.shape
    _, C = w_t.shape

    # ---- Tiny-batch fast path: whole problem is a single VMEM-resident tile. ----
    # Grid-less call: every block equals the full array (always a legal block shape),
    # so there is no padding, no slicing and no per-grid-step overhead.
    if B <= block_b:
        return pl.pallas_call(
            _linear_kernel,
            out_shape=jax.ShapeDtypeStruct((B, C), state.dtype),
        )(state, w_t, b_row)

    # ---- Large-batch tiled path. ----
    # Sublane-aligned batch tile (multiple of 8; default 1024 rows is also a multiple
    # of 256 for full v6e/v7x MXU rows and keeps double-buffered VMEM use ~hundreds
    # of KiB at D=32, C=8).
    TB = _round_up(min(block_b, B), 8)
    # Pad the batch only to a multiple of 8 (not of TB): worst-case waste < 8 rows.
    B8 = _round_up(B, 8)
    state_p = state if B8 == B else jnp.pad(state, ((0, B8 - B), (0, 0)))

    grid = (pl.cdiv(B8, TB),)  # partial final tile handled by Pallas (masked writes)
    batch_sem = pltpu.CORE_PARALLEL if core_parallel else "parallel"

    out = pl.pallas_call(
        _linear_kernel,
        out_shape=jax.ShapeDtypeStruct((B8, C), state.dtype),
        grid=grid,
        in_specs=[
            pl.BlockSpec((TB, D), lambda i: (i, 0)),  # streamed batch tile
            pl.BlockSpec((D, C), lambda i: (0, 0)),   # resident weight (constant block)
            pl.BlockSpec((1, C), lambda i: (0, 0)),   # resident bias row
        ],
        out_specs=pl.BlockSpec((TB, C), lambda i: (i, 0)),
        compiler_params=pltpu.CompilerParams(
            dimension_semantics=(batch_sem,),
        ),
    )(state_p, w_t, b_row)

    return out if B8 == B else out[:B]


if __name__ == "__main__":
    # Module config: input_dim=32, n_choices=7 -> self.n_choices = 8 output units.
    input_dim = 32
    n_choices = 7
    out_dim = n_choices + 1
    batch = 2

    key = jax.random.PRNGKey(0)
    k_x, k_w, k_b = jax.random.split(key, 3)

    # Deterministic init mimicking nn.Linear: U(-1/sqrt(D), 1/sqrt(D)).
    bound = 1.0 / (input_dim ** 0.5)
    state = jax.random.normal(k_x, (batch, input_dim), dtype=jnp.float32)
    weight = jax.random.uniform(
        k_w, (out_dim, input_dim), minval=-bound, maxval=bound, dtype=jnp.float32
    )
    bias = jax.random.uniform(
        k_b, (out_dim,), minval=-bound, maxval=bound, dtype=jnp.float32
    )

    # One-time parameter repack (not on the per-call critical path).
    w_t, b_row = prepare_params(weight, bias)
    (w_t, b_row) = jax.block_until_ready((w_t, b_row))

    # Module-sized call: takes the grid-less tiny-batch fast path.
    out = inform_slot_tracker_forward(state, w_t, b_row)
    out = jax.block_until_ready(out)

    ref = state @ weight.T + bias
    assert out.shape == (batch, out_dim)
    assert jnp.allclose(out, ref, atol=1e-5, rtol=1e-5)

    # Also exercise the tiled large-batch path (non-divisible B -> partial final tile).
    big_batch = 300
    state_big = jax.random.normal(k_x, (big_batch, input_dim), dtype=jnp.float32)
    out_big = inform_slot_tracker_forward(state_big, w_t, b_row, block_b=128)
    out_big = jax.block_until_ready(out_big)
    ref_big = state_big @ weight.T + bias
    assert out_big.shape == (big_batch, out_dim)
    assert jnp.allclose(out_big, ref_big, atol=1e-5, rtol=1e-5)

    print("KERNEL_OK")
</pallas_src>

<mosaic_0001>
module attributes {stable_mosaic.version = 11 : i64} {
  func.func @_linear_kernel(%arg0: memref<2x32xf32, #tpu.memory_space<vmem>>, %arg1: memref<32x8xf32, #tpu.memory_space<vmem>>, %arg2: memref<1x8xf32, #tpu.memory_space<vmem>>, %arg3: memref<2x8xf32, #tpu.memory_space<vmem>>) attributes {dimension_semantics = [], scalar_prefetch = 0 : i64, scratch_operands = 0 : i64, tpu.core_type = #tpu.core_type<tc>} {
    %c0 = arith.constant 0 : index
    %c0_0 = arith.constant 0 : index
    %0 = vector.load %arg0[%c0, %c0_0] : memref<2x32xf32, #tpu.memory_space<vmem>>, vector<2x32xf32>
    %c0_1 = arith.constant 0 : index
    %c0_2 = arith.constant 0 : index
    %1 = vector.load %arg1[%c0_1, %c0_2] : memref<32x8xf32, #tpu.memory_space<vmem>>, vector<32x8xf32>
    %cst = arith.constant dense<0.000000e+00> : vector<2x8xf32>
    %2 = tpu.matmul %0, %1, %cst {dimension_numbers = #tpu.dot_dimension_numbers<[1], [0], [0], [1], [0, 0, 1, 1], [], []>} : vector<2x32xf32>, vector<32x8xf32>, vector<2x8xf32> -> vector<2x8xf32>
    %c0_3 = arith.constant 0 : index
    %c0_4 = arith.constant 0 : index
    %3 = vector.load %arg2[%c0_3, %c0_4] : memref<1x8xf32, #tpu.memory_space<vmem>>, vector<1x8xf32>
    %4 = vector.broadcast %3 : vector<1x8xf32> to vector<2x8xf32>
    %5 = arith.addf %2, %4 : vector<2x8xf32>
    %c0_5 = arith.constant 0 : index
    %c0_6 = arith.constant 0 : index
    %6 = vector.load %arg3[%c0_5, %c0_6] : memref<2x8xf32, #tpu.memory_space<vmem>>, vector<2x8xf32>
    tpu.vector_store %arg3[%c0_5, %c0_6], %5 {strides = array<i32>} : memref<2x8xf32, #tpu.memory_space<vmem>>, vector<2x8xf32>,
    return
  }
}

</mosaic_0001>

<bundles_post_ra>
// kernel: inform_slot_tracker_forward.1
= control target key start
LH: loop header
LB: loop body
LE: loop exit
PB: predicated region body
PF: predicated region fallthrough
CT: control target
= control target key end

     0   :  { %v169_v3 = vmov 0.0|0.0   ;;  %vm170_vm0 = vmmov 0   ;;  %v171_v6 = vmov 0.0   ;;  %s223_s0 = inlined_call_operand.vmem [shape: f32[2,32], index: 0, kind: input, shape index: {}]   ;;  %s224_s1 = inlined_call_operand.vmem [shape: f32[32,8], index: 1, kind: input, shape index: {}]   ;;  %s225_s2 = inlined_call_operand.vmem [shape: f32[1,8], index: 2, kind: input, shape index: {}]   ;;  %s226_s3 = inlined_call_operand.hbm [shape: f32[2,8], index: 3, kind: output, shape index: {}]  }
   0x1   :  { %v16_v0 = vld [vmem:[%s224_s1] sm:$0xff]  ;;  %v17_v1 = vld [vmem:[%s224_s1 + $0x8] sm:$0xff]  ;;  %v18_v2 = vld [vmem:[%s224_s1 + $0x10] sm:$0xff]  ;;  %135 = vmatprep.subr.bf16.mxu0 %v169_v3  ;;  %132 = vmatprep.mubr.msk.f32.mxu0 %vm170_vm0, %v171_v6 }
   0x2   :  { %v136_v4 = vpack.c.bf16 %v17_v1, %v16_v0  ;;  %v19_v5 = vld [vmem:[%s224_s1 + $0x18] sm:$0xff] }
   0x3   :  { %8 = vsyncpa [#allocation3], 0  ;;  %v139_v7 = vpack.c.bf16 %v19_v5, %v18_v2  ;;  %v15_v8 = vld [vmem:[%s223_s0] sm:$0x3]  ;;  %vm27_vm1 = vcmask 261120   ;;  %s172_s24 = smov [#allocation2]  }
   0x4   :  { %137 = vmatpush3.bf16.msra.mxu0 %v136_v4  ;;  %v117_v9 = vld [vmem:[%s225_s2] ss:$0 sm:$0xff]  ;;  %s109_s1 = sshll.u32 %s172_s24, 4  ;;  %vm101_vm2 = vcmask 58368   ;;  %s110_s1 = int_to_ptr.vmem [resolvable:$true] %s109_s1 }
   0x5   :  { %138 = vmatprep.subr.bf16.mxu0 %v169_v3  ;;  %s145_s25 = scalar_lea.vmem %s110_s1, 32  ;;  %p150_p1 = scmp.lt.s32.totalorder %s110_s1, %s110_s1 }
   0x6   :  { %p146_p0 = scmp.ne.s32.totalorder %s110_s1, %s145_s25  ;;  %p151_p2 = scmp.lt.s32.totalorder %s145_s25, %s145_s25 }
   0x8   :  { %140 = vmatpush3.bf16.msra.mxu0 %v139_v7  ;;  %p152_p3 = por %p151_p2, %p150_p1 }
   0xa   :  { %p153_p4 = pnand %p152_p3, %p146_p0 }
   0xb   :  { %133 = vmatmul.mubr.msk.f32.vlgmr.msra.gmra.mrb[0].mxu0 %vm27_vm1, %v15_v8 }
  0xde   :  { %v97_v10 = vpop.f32.mrb[0].mxu0 }
  0xdf   :  { %v98_v11 = vadd.f32 %v117_v9, %v97_v10  ;;  %v134_v12 = vpop.f32.mrb[1].mxu0 }
  0xe1   :  { %102 = vst.msk [vmem:[#allocation2] sm:$0x3] %vm101_vm2, %v98_v11 }
  0xe2   :  { %156 = shalt.err (!%p153_p4)
}
  0xe3   :  { %s157_s27 = scalar_lea.hbm %s226_s3, 32 }
  0xe4   :  { %p158_p5 = scmp.ne.s32.totalorder %s226_s3, %s157_s27  ;;  %p161_p6 = scmp.lt.u32.totalorder %s157_s27, %s226_s3 }
  0xe6   :  { %p163_p7 = pnand %p161_p6, %p158_p5 }
  0xe8   :  { %166 = shalt.err (!%p163_p7)
}
  0xe9   :  { %112 = dma.vmem_to_hbm [thread:$0]  %s110_s1, 32, %s226_s3, [#allocation3]  }
  0xea   :  { %167 = dma.done.wait [#allocation3], 32  }
  0xeb   :  { %168 = vsyncadd [#allocation3], 4294967264 }
  0xec   :  { %116 = vsyncpa [#allocation3], 1 }

</bundles_post_ra>
